<compile_context>
chip_gen: v7x
topology: tpu7x:2x2x1
jax: 0.10.0
libtpu: 0.0.40
codegen_flags: <defaults>
</compile_context>

<pallas_src>
import math

import jax
import jax.numpy as jnp
from jax.experimental import pallas as pl
from jax.experimental.pallas import tpu as pltpu


# --------------------------------------------------------------------------
# kernel factory
# --------------------------------------------------------------------------
def _make_kernel(G, n_chunks, N, C, has_bias, bias_batched, out_dtype):
    """G windows per inner chunk, n_chunks chunks per grid step, window len N."""
    GN = G * N

    def body(x_ref, w_ref, b_ref, bias_ref, o_ref):
        # (3, C, C) / (3, 1, C): q/k/v selected on the leading axis -> no lane slices
        wq, wk, wv = w_ref[0], w_ref[1], w_ref[2]          # bf16 (C, C)
        bq, bk, bv = b_ref[0], b_ref[1], b_ref[2]          # f32  (1, C)

        def chunk(i, carry):
            r0 = i * GN
            if not isinstance(i, int):
                r0 = pl.multiple_of(r0, GN)                # aligned sublane offset

            # bf16 operands, f32 accumulation (softmax scale already in wq/bq)
            xc = x_ref[pl.ds(r0, GN), :].astype(jnp.bfloat16)          # (G*N, C)
            q = (jnp.dot(xc, wq, preferred_element_type=jnp.float32) + bq).reshape(G, N, C)
            k = (jnp.dot(xc, wk, preferred_element_type=jnp.float32) + bk).reshape(G, N, C)
            v = (jnp.dot(xc, wv, preferred_element_type=jnp.float32) + bv).reshape(G, N, C)

            # scores: contract last dims (no explicit transpose), bf16 -> f32 acc
            s = jnp.einsum("bnd,bmd->bnm",
                           q.astype(jnp.bfloat16), k.astype(jnp.bfloat16),
                           preferred_element_type=jnp.float32)
            if has_bias:
                if bias_batched:
                    s = s + bias_ref[pl.ds(i * G, G), :, :].astype(jnp.float32)
                else:
                    s = s + bias_ref[...].astype(jnp.float32)   # (1, N, N) broadcast

            # numerically-stable softmax in f32; divide goes to the EUP slot
            # (approx=True: few-ULP error, well inside the test tolerance)
            m = jnp.max(s, axis=-1, keepdims=True)
            p = jnp.exp(s - m)
            l = jnp.sum(p, axis=-1, keepdims=True)
            p = p * pl.reciprocal(l, approx=True)

            o = jnp.einsum("bnm,bmd->bnd",
                           p.astype(jnp.bfloat16), v.astype(jnp.bfloat16),
                           preferred_element_type=jnp.float32)
            o_ref[pl.ds(r0, GN), :] = o.reshape(GN, C).astype(out_dtype)
            return carry

        if n_chunks == 1:
            chunk(0, 0)
        else:
            jax.lax.fori_loop(0, n_chunks, chunk, 0, unroll=(n_chunks <= 4))

    if has_bias:
        def kernel(x_ref, w_ref, b_ref, bias_ref, o_ref):
            body(x_ref, w_ref, b_ref, bias_ref, o_ref)
    else:
        def kernel(x_ref, w_ref, b_ref, o_ref):
            body(x_ref, w_ref, b_ref, None, o_ref)
    return kernel


# --------------------------------------------------------------------------
# generation-aware tiling plan
# --------------------------------------------------------------------------
def _plan(B, N_pad, C, x_itemsize, out_itemsize, bias_bytes_per_window):
    """Pick (Bt windows per grid step, G windows per inner chunk, vmem limit)."""
    cap_bytes = 64 * 1024 * 1024          # conservative fallback (v7x-sized)
    try:
        cap_bytes = int(getattr(pltpu.get_tpu_info(), "vmem_capacity_bytes", cap_bytes))
    except Exception:
        pass

    if cap_bytes >= 96 * 1024 * 1024:
        # v5e / v6e: 128 MiB VMEM, single TensorCore -> grid >= 2 only for
        # DMA/compute pipelining, not for parallelism.
        budget, vmem_limit, min_steps = 32 << 20, 64 << 20, 2
    else:
        # v7x: 64 MiB VMEM per TC, 2 TensorCores -> need >= 2 steps per core.
        budget, vmem_limit, min_steps = 20 << 20, 32 << 20, 4

    # Per-window, double-buffered HBM<->VMEM block bytes (x block, out block,
    # batched-bias block).  The per-chunk compute live set (xc, q/k/v f32+bf16,
    # scores, probs, o accumulator), the (3,C,C) weights and a broadcast bias are
    # bounded (<= ~1-2 MiB with the <=512-row chunking) and covered by `reserve`.
    blk = 2 * (N_pad * C * x_itemsize + N_pad * C * out_itemsize + bias_bytes_per_window)
    reserve = 6 << 20
    cap = max(1, (budget - reserve) // blk)

    divisors = [d for d in range(1, B + 1) if B % d == 0 and d <= cap]
    pref = [d for d in divisors if B // d >= min_steps]
    Bt = max(pref) if pref else max(divisors)

    # windows per inner fori_loop chunk: keep the projection M-dim <= ~512 rows
    rows_target = 512
    g_cap = max(1, rows_target // N_pad)
    G = max(d for d in range(1, Bt + 1) if Bt % d == 0 and d <= g_cap)
    return Bt, G, vmem_limit


# --------------------------------------------------------------------------
# wrapper
# --------------------------------------------------------------------------
def attention(x, w_qkv, b_qkv, bias=None, mask=None):
    """Pallas equivalent of Attention.forward(x, bias, mask=None).

    x:      (B, N, C)
    w_qkv:  (3C, C)   PyTorch nn.Linear weight layout
    b_qkv:  (3C,)     PyTorch nn.Linear bias
    bias:   optional, (N,N) / (1,N,N) / (B,N,N), added to scores pre-softmax
    """
    B, N, C = x.shape
    assert w_qkv.shape == (3 * C, C) and b_qkv.shape == (3 * C,)
    # TODO(synk): the `mask` argument (mask.unsqueeze(2) => 4-D windowed layout in
    # Swin usage) is not implemented; only the mask=None path is supported.
    assert mask is None, "mask path not implemented"

    out_dtype = x.dtype
    scale = 1.0 / math.sqrt(C)

    # (3, C, C) weight / (3, 1, C) bias: y = x @ W^T + b, rows [0:C)=q etc.
    w3 = jnp.transpose(jnp.asarray(w_qkv, jnp.float32).reshape(3, C, C), (0, 2, 1))
    b3 = jnp.asarray(b_qkv, jnp.float32).reshape(3, 1, C)
    # fold the softmax scale into the q projection in f32, THEN cast to bf16
    w3 = w3.at[0].multiply(scale)
    b3 = b3.at[0].multiply(scale)
    w3 = w3.astype(jnp.bfloat16)     # bf16 MXU operands, f32 accumulation
    # b3 stays f32: 3*C values, negligible DMA, added straight to the f32 acc.

    # pad N to a multiple of 8 so in-kernel reshapes only touch leading dims
    N_pad = ((N + 7) // 8) * 8
    x_p = x if N_pad == N else jnp.pad(x, ((0, 0), (0, N_pad - N), (0, 0)))

    bias_arr = None
    if bias is not None:
        bias_arr = jnp.asarray(bias, jnp.float32)
        if bias_arr.ndim == 2:
            bias_arr = bias_arr[None]
        if N_pad != N:
            bias_arr = jnp.pad(bias_arr, ((0, 0), (0, N_pad - N), (0, N_pad - N)))
    if N_pad != N:
        # mask padded key columns so the softmax ignores them
        col_mask = jnp.where(jnp.arange(N_pad) < N, 0.0, -1e9).reshape(1, 1, N_pad)
        if bias_arr is None:
            bias_arr = jnp.broadcast_to(col_mask, (1, N_pad, N_pad))
        else:
            bias_arr = bias_arr + col_mask

    has_bias = bias_arr is not None
    bias_batched = has_bias and bias_arr.shape[0] != 1
    if has_bias:
        bias_arr = bias_arr.astype(jnp.bfloat16)    # halve bias DMA bytes
        if bias_batched:
            bias_arr = jnp.broadcast_to(bias_arr, (B, N_pad, N_pad))

    x_itemsize = jnp.dtype(x.dtype).itemsize
    out_itemsize = jnp.dtype(out_dtype).itemsize
    bias_pw = (N_pad * N_pad * 2) if bias_batched else 0
    Bt, G, vmem_limit = _plan(B, N_pad, C, x_itemsize, out_itemsize, bias_pw)
    n_chunks = Bt // G
    grid = (B // Bt,)

    # 2-D (B*N_pad, C) slab: leading-dim merge, layout preserving (N_pad % 8 == 0)
    x2d = x_p.reshape(B * N_pad, C)

    in_specs = [
        pl.BlockSpec((Bt * N_pad, C), lambda b: (b, 0)),      # x slab
        pl.BlockSpec((3, C, C), lambda b: (0, 0, 0)),         # (3,C,C) weights
        pl.BlockSpec((3, 1, C), lambda b: (0, 0, 0)),         # (3,1,C) biases
    ]
    args = [x2d, w3, b3]
    if has_bias:
        if bias_batched:
            in_specs.append(pl.BlockSpec((Bt, N_pad, N_pad), lambda b: (b, 0, 0)))
        else:
            in_specs.append(pl.BlockSpec((1, N_pad, N_pad), lambda b: (0, 0, 0)))
        args.append(bias_arr)

    kernel = _make_kernel(G, n_chunks, N_pad, C, has_bias, bias_batched, out_dtype)

    out2d = pl.pallas_call(
        kernel,
        out_shape=jax.ShapeDtypeStruct((B * N_pad, C), out_dtype),
        grid_spec=pltpu.PrefetchScalarGridSpec(
            num_scalar_prefetch=0,
            grid=grid,
            in_specs=in_specs,
            out_specs=pl.BlockSpec((Bt * N_pad, C), lambda b: (b, 0)),
        ),
        compiler_params=pltpu.CompilerParams(
            dimension_semantics=("parallel",),
            vmem_limit_bytes=vmem_limit,
        ),
    )(*args)

    out = out2d.reshape(B, N_pad, C)
    if N_pad != N:
        out = out[:, :N, :]
    return out


# --------------------------------------------------------------------------
# pure-JAX reference (mirrors the PyTorch forward, all-f32)
# --------------------------------------------------------------------------
def _attention_ref(x, w_qkv, b_qkv, bias=None):
    C = x.shape[-1]
    y = x @ w_qkv.T + b_qkv
    q, k, v = jnp.split(y, 3, axis=-1)
    s = jnp.einsum("bnc,bmc->bnm", q, k) / math.sqrt(C)
    if bias is not None:
        b = jnp.asarray(bias)
        if b.ndim == 2:
            b = b[None]
        s = s + b
    p = jax.nn.softmax(s, axis=-1)
    return jnp.einsum("bnm,bmc->bnc", p, v)


if __name__ == "__main__":
    key = jax.random.PRNGKey(0)
    # bf16 matmul operands (per perf review) -> compare against the f32
    # reference at a correspondingly looser tolerance.
    TOL = dict(atol=2e-2, rtol=2e-2)

    def run_case(idx, B, N, C, bias_mode):
        kx, kw, kb, kbias = jax.random.split(jax.random.fold_in(key, idx), 4)
        x = jax.random.normal(kx, (B, N, C), dtype=jnp.float32)
        w_qkv = jax.random.normal(kw, (3 * C, C), dtype=jnp.float32) * 0.05
        b_qkv = jax.random.normal(kb, (3 * C,), dtype=jnp.float32) * 0.05
        if bias_mode == "batched":
            bias = jax.random.normal(kbias, (B, N, N), dtype=jnp.float32) * 0.1
        elif bias_mode == "broadcast":
            bias = jax.random.normal(kbias, (1, N, N), dtype=jnp.float32) * 0.1
        else:
            bias = None

        out = attention(x, w_qkv, b_qkv, bias)
        jax.block_until_ready(out)
        ref = _attention_ref(x, w_qkv, b_qkv, bias)
        assert out.shape == (B, N, C)
        assert jnp.allclose(out, ref, **TOL), (
            f"mismatch: case {idx} (bias={bias_mode}, B={B}, N={N}, C={C})")

    run_case(0, 64, 8, 32, "batched")     # per-window bias
    run_case(1, 64, 8, 32, "broadcast")   # (1, N, N) relative-position-style bias
    run_case(2, 64, 8, 32, "none")        # no bias (specialized kernel)
    run_case(3, 32, 12, 32, "broadcast")  # N % 8 != 0 -> padded N + masked key cols
    run_case(4, 512, 8, 32, "batched")    # large B -> multi-chunk fori_loop per step

    print("KERNEL_OK")
</pallas_src>

<mosaic_0001>
module attributes {stable_mosaic.version = 11 : i64} {
  func.func @kernel(%arg0: i32, %arg1: memref<128x32xf32, #tpu.memory_space<vmem>>, %arg2: memref<3x32x32xbf16, #tpu.memory_space<vmem>>, %arg3: memref<3x1x32xf32, #tpu.memory_space<vmem>>, %arg4: memref<16x8x8xbf16, #tpu.memory_space<vmem>>, %arg5: memref<128x32xf32, #tpu.memory_space<vmem>>) attributes {dimension_semantics = [#tpu.dimension_semantics<parallel>], iteration_bounds = array<i64: 4>, scalar_prefetch = 0 : i64, scratch_operands = 0 : i64, tpu.core_type = #tpu.core_type<tc>, window_params = [{transform_indices = @transform_0, window_bounds = array<i64: 128, 32>}, {pipeline_mode = #tpu.pipeline_mode<synchronous>, transform_indices = @transform_1, window_bounds = array<i64: 3, 32, 32>}, {pipeline_mode = #tpu.pipeline_mode<synchronous>, transform_indices = @transform_2, window_bounds = array<i64: 3, 1, 32>}, {transform_indices = @transform_3, window_bounds = array<i64: 16, 8, 8>}, {transform_indices = @transform_4, window_bounds = array<i64: 128, 32>}]} {
    %c0 = arith.constant 0 : index
    %c0_0 = arith.constant 0 : index
    %c0_1 = arith.constant 0 : index
    %0 = vector.load %arg2[%c0, %c0_0, %c0_1] : memref<3x32x32xbf16, #tpu.memory_space<vmem>>, vector<1x32x32xbf16>
    %1 = vector.shape_cast %0 : vector<1x32x32xbf16> to vector<32x32xbf16>
    %c1 = arith.constant 1 : index
    %c0_2 = arith.constant 0 : index
    %c0_3 = arith.constant 0 : index
    %2 = vector.load %arg2[%c1, %c0_2, %c0_3] : memref<3x32x32xbf16, #tpu.memory_space<vmem>>, vector<1x32x32xbf16>
    %3 = vector.shape_cast %2 : vector<1x32x32xbf16> to vector<32x32xbf16>
    %c2 = arith.constant 2 : index
    %c0_4 = arith.constant 0 : index
    %c0_5 = arith.constant 0 : index
    %4 = vector.load %arg2[%c2, %c0_4, %c0_5] : memref<3x32x32xbf16, #tpu.memory_space<vmem>>, vector<1x32x32xbf16>
    %5 = vector.shape_cast %4 : vector<1x32x32xbf16> to vector<32x32xbf16>
    %c0_6 = arith.constant 0 : index
    %c0_7 = arith.constant 0 : index
    %c0_8 = arith.constant 0 : index
    %6 = vector.load %arg3[%c0_6, %c0_7, %c0_8] : memref<3x1x32xf32, #tpu.memory_space<vmem>>, vector<1x1x32xf32>
    %7 = vector.shape_cast %6 : vector<1x1x32xf32> to vector<1x32xf32>
    %c1_9 = arith.constant 1 : index
    %c0_10 = arith.constant 0 : index
    %c0_11 = arith.constant 0 : index
    %8 = vector.load %arg3[%c1_9, %c0_10, %c0_11] : memref<3x1x32xf32, #tpu.memory_space<vmem>>, vector<1x1x32xf32>
    %9 = vector.shape_cast %8 : vector<1x1x32xf32> to vector<1x32xf32>
    %c2_12 = arith.constant 2 : index
    %c0_13 = arith.constant 0 : index
    %c0_14 = arith.constant 0 : index
    %10 = vector.load %arg3[%c2_12, %c0_13, %c0_14] : memref<3x1x32xf32, #tpu.memory_space<vmem>>, vector<1x1x32xf32>
    %11 = vector.shape_cast %10 : vector<1x1x32xf32> to vector<1x32xf32>
    %c0_15 = arith.constant 0 : index
    %c0_16 = arith.constant 0 : index
    %12 = vector.load %arg1[%c0_15, %c0_16] : memref<128x32xf32, #tpu.memory_space<vmem>>, vector<128x32xf32>
    %13 = arith.truncf %12 : vector<128x32xf32> to vector<128x32xbf16>
    %cst = arith.constant dense<0.000000e+00> : vector<128x32xf32>
    %14 = tpu.matmul %13, %1, %cst {dimension_numbers = #tpu.dot_dimension_numbers<[1], [0], [0], [1], [0, 0, 1, 1], [], []>} : vector<128x32xbf16>, vector<32x32xbf16>, vector<128x32xf32> -> vector<128x32xf32>
    %15 = vector.broadcast %7 : vector<1x32xf32> to vector<128x32xf32>
    %16 = arith.addf %14, %15 : vector<128x32xf32>
    %17 = vector.shape_cast %16 : vector<128x32xf32> to vector<16x8x32xf32>
    %cst_17 = arith.constant dense<0.000000e+00> : vector<128x32xf32>
    %18 = tpu.matmul %13, %3, %cst_17 {dimension_numbers = #tpu.dot_dimension_numbers<[1], [0], [0], [1], [0, 0, 1, 1], [], []>} : vector<128x32xbf16>, vector<32x32xbf16>, vector<128x32xf32> -> vector<128x32xf32>
    %19 = vector.broadcast %9 : vector<1x32xf32> to vector<128x32xf32>
    %20 = arith.addf %18, %19 : vector<128x32xf32>
    %21 = vector.shape_cast %20 : vector<128x32xf32> to vector<16x8x32xf32>
    %cst_18 = arith.constant dense<0.000000e+00> : vector<128x32xf32>
    %22 = tpu.matmul %13, %5, %cst_18 {dimension_numbers = #tpu.dot_dimension_numbers<[1], [0], [0], [1], [0, 0, 1, 1], [], []>} : vector<128x32xbf16>, vector<32x32xbf16>, vector<128x32xf32> -> vector<128x32xf32>
    %23 = vector.broadcast %11 : vector<1x32xf32> to vector<128x32xf32>
    %24 = arith.addf %22, %23 : vector<128x32xf32>
    %25 = vector.shape_cast %24 : vector<128x32xf32> to vector<16x8x32xf32>
    %26 = arith.truncf %17 : vector<16x8x32xf32> to vector<16x8x32xbf16>
    %27 = arith.truncf %21 : vector<16x8x32xf32> to vector<16x8x32xbf16>
    "tpu.trace_start"() <{level = 10 : i32, message = "bnd,bmd->bnm"}> : () -> ()
    %cst_19 = arith.constant dense<0.000000e+00> : vector<16x8x8xf32>
    %28 = tpu.matmul %26, %27, %cst_19 {dimension_numbers = #tpu.dot_dimension_numbers<[2], [2], [1], [1], [0, 0, 0, 1, 1, 1], [0], [0]>} : vector<16x8x32xbf16>, vector<16x8x32xbf16>, vector<16x8x8xf32> -> vector<16x8x8xf32>
    "tpu.trace_stop"() : () -> ()
    %c0_20 = arith.constant 0 : index
    %c0_21 = arith.constant 0 : index
    %c0_22 = arith.constant 0 : index
    %29 = vector.load %arg4[%c0_20, %c0_21, %c0_22] : memref<16x8x8xbf16, #tpu.memory_space<vmem>>, vector<16x8x8xbf16>
    %30 = arith.extf %29 : vector<16x8x8xbf16> to vector<16x8x8xf32>
    %31 = arith.addf %28, %30 : vector<16x8x8xf32>
    %cst_23 = arith.constant dense<0xFF800000> : vector<16x8xf32>
    %32 = vector.multi_reduction <maximumf>, %31, %cst_23 [2] : vector<16x8x8xf32> to vector<16x8xf32>
    %33 = vector.shape_cast %32 : vector<16x8xf32> to vector<16x8x1xf32>
    %34 = vector.broadcast %33 : vector<16x8x1xf32> to vector<16x8x8xf32>
    %35 = arith.subf %31, %34 : vector<16x8x8xf32>
    %36 = math.exp %35 : vector<16x8x8xf32>
    %cst_24 = arith.constant dense<0.000000e+00> : vector<16x8xf32>
    %37 = vector.multi_reduction <add>, %36, %cst_24 [2] : vector<16x8x8xf32> to vector<16x8xf32>
    %38 = vector.shape_cast %37 : vector<16x8xf32> to vector<16x8x1xf32>
    %39 = tpu.reciprocal %38 {approx = true} : vector<16x8x1xf32> -> vector<16x8x1xf32>
    %40 = vector.broadcast %39 : vector<16x8x1xf32> to vector<16x8x8xf32>
    %41 = arith.mulf %36, %40 : vector<16x8x8xf32>
    %42 = arith.truncf %41 : vector<16x8x8xf32> to vector<16x8x8xbf16>
    %43 = arith.truncf %25 : vector<16x8x32xf32> to vector<16x8x32xbf16>
    "tpu.trace_start"() <{level = 10 : i32, message = "bnm,bmd->bnd"}> : () -> ()
    %cst_25 = arith.constant dense<0.000000e+00> : vector<16x8x32xf32>
    %44 = tpu.matmul %42, %43, %cst_25 {dimension_numbers = #tpu.dot_dimension_numbers<[2], [1], [1], [2], [0, 0, 0, 1, 1, 2], [0], [0]>} : vector<16x8x8xbf16>, vector<16x8x32xbf16>, vector<16x8x32xf32> -> vector<16x8x32xf32>
    "tpu.trace_stop"() : () -> ()
    %45 = vector.shape_cast %44 : vector<16x8x32xf32> to vector<128x32xf32>
    %c0_26 = arith.constant 0 : index
    %c0_27 = arith.constant 0 : index
    %46 = vector.load %arg5[%c0_26, %c0_27] : memref<128x32xf32, #tpu.memory_space<vmem>>, vector<128x32xf32>
    tpu.vector_store %arg5[%c0_26, %c0_27], %45 {strides = array<i32>} : memref<128x32xf32, #tpu.memory_space<vmem>>, vector<128x32xf32>,
    return
  }
  func.func @transform_0(%arg0: i32) -> (i32, i32) {
    %c0_i32 = arith.constant 0 : i32
    %c0_i32_0 = arith.constant 0 : i32
    return %arg0, %c0_i32 : i32, i32
  }
  func.func @transform_1(%arg0: i32) -> (i32, i32, i32) {
    %c0_i32 = arith.constant 0 : i32
    %c0_i32_0 = arith.constant 0 : i32
    %c0_i32_1 = arith.constant 0 : i32
    %c0_i32_2 = arith.constant 0 : i32
    return %c0_i32, %c0_i32_0, %c0_i32_1 : i32, i32, i32
  }
  func.func @transform_2(%arg0: i32) -> (i32, i32, i32) {
    %c0_i32 = arith.constant 0 : i32
    %c0_i32_0 = arith.constant 0 : i32
    %c0_i32_1 = arith.constant 0 : i32
    %c0_i32_2 = arith.constant 0 : i32
    return %c0_i32, %c0_i32_0, %c0_i32_1 : i32, i32, i32
  }
  func.func @transform_3(%arg0: i32) -> (i32, i32, i32) {
    %c0_i32 = arith.constant 0 : i32
    %c0_i32_0 = arith.constant 0 : i32
    %c0_i32_1 = arith.constant 0 : i32
    return %arg0, %c0_i32, %c0_i32_0 : i32, i32, i32
  }
  func.func @transform_4(%arg0: i32) -> (i32, i32) {
    %c0_i32 = arith.constant 0 : i32
    %c0_i32_0 = arith.constant 0 : i32
    return %arg0, %c0_i32 : i32, i32
  }
}

</mosaic_0001>

<bundles_post_ra>
// kernel: tpu_custom_call.1
= control target key start
LH: loop header
LB: loop body
LE: loop exit
PB: predicated region body
PF: predicated region fallthrough
CT: control target
= control target key end

     0   :  { %s3055_s15 = smov 0   ;;  %s3669_s0 = inlined_call_operand.vmem [shape: f32[512,32], index: 0, kind: input, shape index: {}]   ;;  %s3670_s1 = inlined_call_operand.vmem [shape: bf16[3,32,32], index: 1, kind: input, shape index: {}]   ;;  %s3671_s2 = inlined_call_operand.vmem [shape: f32[3,1,32], index: 2, kind: input, shape index: {}]   ;;  %s3672_s3 = inlined_call_operand.vmem [shape: bf16[64,8,8], index: 3, kind: input, shape index: {}]   ;;  %s3673_s4 = inlined_call_operand.vmem [shape: f32[512,32], index: 4, kind: output, shape index: {}]  }
   0x1 LB: > { %s2467_s16 = sadd.s32 4294967295, %s3026_s15   ;;  %p2471_p0 = scmp.ge.s32.totalorder %s3026_s15, 1  ;;  %s3026_s15 = sphi %s3055_s15, %s14_s15  }
   0x2   : > { %p174_p1 = scmp.lt.s32.totalorder %s3026_s15, 5 }
   0x4   : > { %p175_p2 = pnand %p2471_p0, %p174_p1 }
   0x5   : > { %v2950_v0 = vld [vmem:[%s3670_s1 + $0x10] sm:$0xff] (!%p175_p2)   ;;  %s2472_s19 = sshll.u32 (!%p175_p2), %s2467_s16, 4  ;;  %v2951_v1 = vld [vmem:[%s3670_s1 + $0x18] sm:$0xff] (!%p175_p2)   ;;  %v2952_v2 = vld [vmem:[%s3670_s1] sm:$0xff] (!%p175_p2)   ;;  %vm285_vm0 = vcmask (!%p175_p2), 261120   ;;  %v3028_v30 = vmov (!%p175_p2), 0.0  }
   0x6   : > { %178 = sbr.rel (%p175_p2) target bundleno = 1063 (0x427), region = 36  ;;  %p206_p3 = scmp.lt.s32.totalorder (!%p175_p2), %s2472_s19, 63  ;;  %2708 = vmatprep.subr.bf16.mxu1 (!%p175_p2), %v2950_v0  ;;  %v2953_v3 = vld [vmem:[%s3670_s1 + $0x8] sm:$0xff] (!%p175_p2)   ;;  %2688 = vmatprep.subr.bf16.mxu0 (!%p175_p2), %v2952_v2  ;;  %v2954_v4 = vld [vmem:[%s3670_s1 + $0x20] sm:$0xff] (!%p175_p2)   ;;  %vm3029_vm1 = vmmov (!%p175_p2), 0   ;;  %vm1649_vm2 = vcmask (!%p175_p2), 1043456  }
   0x7   : > { %2709 = vmatpush3.bf16.msra.mxu1 (!%p175_p2), %v2950_v0  ;;  %2689 = vmatpush3.bf16.msra.mxu0 (!%p175_p2), %v2952_v2  ;;  %v2955_v14 = vld [vmem:[%s3670_s1 + $0x28] sm:$0xff] (!%p175_p2)   ;;  %v3140_v31 = vld [vmem:[%s3671_s2 + $0x1] ss:$0 sm:$0xff] (!%p175_p2)  ;;  %v3146_v39 = vld [vmem:[%s3671_s2] ss:$0 sm:$0xff] (!%p175_p2)  ;;  %vm1437_vm3 = vcmask (!%p175_p2), 64512  }
   0x8   : > { %2710 = vmatprep.subr.bf16.mxu1 (!%p175_p2), %v2951_v1  ;;  %2690 = vmatprep.subr.bf16.mxu0 (!%p175_p2), %v2953_v3 }
   0xb   : > { %2711 = vmatpush3.bf16.msra.mxu1 (!%p175_p2), %v2951_v1  ;;  %2691 = vmatpush3.bf16.msra.mxu0 (!%p175_p2), %v2953_v3 }
   0xc   : > { %2728 = vmatprep.subr.bf16.mxu0 (!%p175_p2), %v2954_v4  ;;  %2748 = vmatprep.subr.bf16.mxu1 (!%p175_p2), %v3028_v30 }
   0xd   : > { %s3675_s19 = smov (!%p206_p3, %s2472_s19), 63 }
   0xe   : > { %s2473_s26 = sshll.u32 %s3675_s19, 3  ;;  %s2475_s14 = sshll.u32 %s3675_s19, 2 }
   0xf   : > { %s3083_s29 = scalar_lea.vmem %s3669_s0, %s2473_s26  ;;  %s3351_s18 = scalar_lea.vmem %s3672_s3, %s2475_s14 }
  0x10   : > { %v243_v5 = vld [vmem:[%s3083_s29] sm:$0xff]  ;;  %v244_v6 = vld [vmem:[%s3083_s29 + $0x8] sm:$0xff]  ;;  %v245_v7 = vld [vmem:[%s3083_s29 + $0x10] sm:$0xff]  ;;  %s3632_s22 = scalar_lea.vmem %s3673_s4, %s2473_s26 }
  0x11   : > { %v259_v8 = vpack.c.bf16 %v244_v6, %v243_v5  ;;  %v246_v9 = vld [vmem:[%s3083_s29 + $0x18] sm:$0xff]  ;;  %v247_v10 = vld [vmem:[%s3083_s29 + $0x20] sm:$0xff]  ;;  %v248_v11 = vld [vmem:[%s3083_s29 + $0x28] sm:$0xff] }
  0x12   : > { %v260_v12 = vpack.c.bf16 %v246_v9, %v245_v7  ;;  %v261_v13 = vpack.c.bf16 %v248_v11, %v247_v10  ;;  %v249_v15 = vld [vmem:[%s3083_s29 + $0x30] sm:$0xff]  ;;  %v250_v16 = vld [vmem:[%s3083_s29 + $0x38] sm:$0xff]  ;;  %v251_v17 = vld [vmem:[%s3083_s29 + $0x40] sm:$0xff] }
  0x13   : > { %2712 = vmatprep.mubr.msk.bf16.mxu1 %vm285_vm0, %v259_v8  ;;  %2692 = vmatprep.mubr.msk.bf16.mxu0 %vm285_vm0, %v259_v8  ;;  %v252_v18 = vld [vmem:[%s3083_s29 + $0x48] sm:$0xff]  ;;  %v262_v19 = vpack.c.bf16 %v250_v16, %v249_v15  ;;  %v253_v21 = vld [vmem:[%s3083_s29 + $0x50] sm:$0xff]  ;;  %v254_v22 = vld [vmem:[%s3083_s29 + $0x58] sm:$0xff] }
  0x14   : > { %2713 = vmatmul.mubr.msk.bf16.vlgmr.msra.gmra.mrb[0].mxu1 %vm285_vm0, %v260_v12  ;;  %2693 = vmatmul.mubr.msk.bf16.vlgmr.msra.gmra.mrb[0].mxu0 %vm285_vm0, %v260_v12  ;;  %v263_v20 = vpack.c.bf16 %v252_v18, %v251_v17  ;;  %v255_v23 = vld [vmem:[%s3083_s29 + $0x60] sm:$0xff]  ;;  %v256_v24 = vld [vmem:[%s3083_s29 + $0x68] sm:$0xff]  ;;  %v264_v25 = vpack.c.bf16 %v254_v22, %v253_v21  ;;  %v257_v27 = vld [vmem:[%s3083_s29 + $0x70] sm:$0xff] }
  0x15   : > { %2716 = vmatprep.mubr.msk.bf16.mxu1 %vm285_vm0, %v261_v13  ;;  %2696 = vmatprep.mubr.msk.bf16.mxu0 %vm285_vm0, %v261_v13  ;;  %v265_v26 = vpack.c.bf16 %v256_v24, %v255_v23  ;;  %v258_v28 = vld [vmem:[%s3083_s29 + $0x78] sm:$0xff] }
  0x16   : > { %2729 = vmatpush3.bf16.msra.mxu0 %v2954_v4  ;;  %v266_v29 = vpack.c.bf16 %v258_v28, %v257_v27 }
  0x17   : > { %2730 = vmatprep.subr.bf16.mxu0 %v2955_v14 }
  0x1a   : > { %2731 = vmatpush3.bf16.msra.mxu0 %v2955_v14 }
  0x1b   : > { %2772 = vmatprep.subr.bf16.mxu0 %v3028_v30 }
  0x1c   : > { %2717 = vmatmul.mubr.msk.bf16.gmra.mrb[4].mxu1 %vm285_vm0, %v262_v19  ;;  %2697 = vmatmul.mubr.msk.bf16.gmra.mrb[4].mxu0 %vm285_vm0, %v262_v19 }
  0x1d   : > { %2720 = vmatprep.mubr.msk.bf16.mxu1 %vm285_vm0, %v263_v20  ;;  %2700 = vmatprep.mubr.msk.bf16.mxu0 %vm285_vm0, %v263_v20 }
  0x24   : > { %2721 = vmatmul.mubr.msk.bf16.gmra.mrb[8].mxu1 %vm285_vm0, %v264_v25  ;;  %2701 = vmatmul.mubr.msk.bf16.gmra.mrb[8].mxu0 %vm285_vm0, %v264_v25 }
  0x25   : > { %2724 = vmatprep.mubr.msk.bf16.mxu1 %vm285_vm0, %v265_v26  ;;  %2704 = vmatprep.mubr.msk.bf16.mxu0 %vm285_vm0, %v265_v26 }
  0x2c   : > { %2725 = vmatmul.mubr.msk.bf16.gmra.mrb[12].mxu1 %vm285_vm0, %v266_v29  ;;  %2705 = vmatmul.mubr.msk.bf16.gmra.mrb[12].mxu0 %vm285_vm0, %v266_v29 }
  0x2d   : > { %2732 = vmatprep.mubr.msk.bf16.mxu0 %vm285_vm0, %v259_v8  ;;  %2750 = vmatprep.mubr.msk.bf16.mxu1 %vm3029_vm1, %v3028_v30 }
  0x34   : > { %2733 = vmatmul.mubr.msk.bf16.vlgmr.msra.gmra.mrb[16].mxu0 %vm285_vm0, %v260_v12 }
  0x35   : > { %2736 = vmatprep.mubr.msk.bf16.mxu0 %vm285_vm0, %v261_v13 }
  0x3c   : > { %2737 = vmatmul.mubr.msk.bf16.gmra.mrb[20].mxu0 %vm285_vm0, %v262_v19 }
  0x3d   : > { %2740 = vmatprep.mubr.msk.bf16.mxu0 %vm285_vm0, %v263_v20 }
  0x44   : > { %2741 = vmatmul.mubr.msk.bf16.gmra.mrb[24].mxu0 %vm285_vm0, %v264_v25 }
  0x45   : > { %2744 = vmatprep.mubr.msk.bf16.mxu0 %vm285_vm0, %v265_v26 }
  0x4c   : > { %2745 = vmatmul.mubr.msk.bf16.gmra.mrb[28].mxu0 %vm285_vm0, %v266_v29 }
  0x4d   : > { %2774 = vmatprep.mubr.msk.bf16.mxu0 %vm3029_vm1, %v3028_v30 }
  0xe7   : > { %v2714_v32 = vpop.f32.mrb[0].mxu1  ;;  %v2694_v34 = vpop.f32.mrb[0].mxu0 }
  0xe8   : > { %v459_v33 = vpop.f32.mrb[1].mxu1  ;;  %v344_v37 = vpop.f32.mrb[1].mxu0  ;;  %v468_v59 = vadd.f32 %v2714_v32, %v3140_v31  ;;  %v353_v17 = vadd.f32 %v2694_v34, %v3146_v39 }
  0xe9   : > { %v460_v35 = vadd.f32 %v3140_v31, %v459_v33  ;;  %v2715_v36 = vpop.f32.mrb[2].mxu1  ;;  %v3148_v40 = vpop.f32.mrb[2].mxu0  ;;  %v345_v45 = vadd.f32 %v3146_v39, %v344_v37 }
  0xea   : > { %v462_v38 = vpop.f32.mrb[3].mxu1  ;;  %v347_v42 = vpop.f32.mrb[3].mxu0  ;;  %v655_v4 = vpack.c.bf16 %v468_v59, %v468_v59  ;;  %v471_v15 = vadd.f32 %v2715_v36, %v3140_v31  ;;  %v639_v26 = vpack.c.bf16 %v353_v17, %v353_v17 }
  0xeb   : > { %v653_v41 = vpack.c.bf16 %v460_v35, %v460_v35  ;;  %v463_v44 = vadd.f32 %v3140_v31, %v462_v38  ;;  %v637_v50 = vpack.c.bf16 %v345_v45, %v345_v45  ;;  %v348_v0 = vadd.f32 %v3146_v39, %v347_v42 }
  0xec   : > { %v797_v14 = vsel %vm285_vm0, %v655_v4, 0  ;;  %v656_v22 = vpack.c.bf16 %v471_v15, %v471_v15 }
  0xed   : > { %v705_v43 = vsel %vm285_vm0, %v653_v41, 0  ;;  %v654_v49 = vpack.c.bf16 %v463_v44, %v463_v44  ;;  %v638_v11 = vpack.c.bf16 %v348_v0, %v348_v0 }
  0xee   : > { %2749 = vmatpush3.bf16.xpose.msra.mxu1 %v705_v43  ;;  %v843_v38 = vsel %vm285_vm0, %v656_v22, 0  ;;  %v356_v43 = vadd.f32 %v3148_v40, %v3146_v39 }
  0xef   : > { %v2718_v46 = vpop.f32.mrb[4].mxu1  ;;  %2754 = vmatprep.subr.bf16.mxu1 %v3028_v30  ;;  %v2698_v48 = vpop.f32.mrb[4].mxu0  ;;  %v751_v60 = vsel %vm285_vm0, %v654_v49, 0 }
  0xf0   : > { %v475_v47 = vpop.f32.mrb[5].mxu1  ;;  %v360_v52 = vpop.f32.mrb[5].mxu0  ;;  %v484_v56 = vadd.f32 %v2718_v46, %v3140_v31  ;;  %v369_v16 = vadd.f32 %v2698_v48, %v3146_v39 }
  0xf1   : > { %v476_v51 = vadd.f32 %v3140_v31, %v475_v47  ;;  %v3155_v53 = vpop.f32.mrb[6].mxu1  ;;  %v3157_v55 = vpop.f32.mrb[6].mxu0  ;;  %v361_v62 = vadd.f32 %v3146_v39, %v360_v52 }
  0xf2   : > { %v478_v54 = vpop.f32.mrb[7].mxu1  ;;  %v3160_v58 = vpop.f32.mrb[7].mxu0  ;;  %v659_v63 = vpack.c.bf16 %v484_v56, %v484_v56  ;;  %v643_v23 = vpack.c.bf16 %v369_v16, %v369_v16  ;;  %v372_v4 = vadd.f32 %v3157_v55, %v3146_v39 }
  0xf3   : > { %v657_v57 = vpack.c.bf16 %v476_v51, %v476_v51  ;;  %v641_v5 = vpack.c.bf16 %v361_v62, %v361_v62  ;;  %v479_v41 = vadd.f32 %v3140_v31, %v478_v54  ;;  %v487_v54 = vadd.f32 %v3155_v53, %v3140_v31 }
  0xf4   : > { %v981_v10 = vsel %vm285_vm0, %v659_v63, 0  ;;  %v364_v59 = vadd.f32 %v3146_v39, %v3160_v58 }
  0xf5   : > { %v889_v61 = vsel %vm285_vm0, %v657_v57, 0  ;;  %2751 = vmatmul.mubr.msk.bf16.vlgmr.msra.gmra.mrb[16].mxu1 %vm285_vm0, %v637_v50  ;;  %v658_v46 = vpack.c.bf16 %v479_v41, %v479_v41  ;;  %v640_v50 = vpack.c.bf16 %v356_v43, %v356_v43 }
  0xf6   : > { %2755 = vmatpush3.bf16.xpose.msra.mxu1 %v751_v60  ;;  %2773 = vmatpush3.bf16.xpose.msra.mxu0 %v889_v61  ;;  %v660_v61 = vpack.c.bf16 %v487_v54, %v487_v54  ;;  %v642_v63 = vpack.c.bf16 %v364_v59, %v364_v59 }
  0xf7   : > { %2756 = vmatprep.mubr.msk.bf16.mxu1 %vm3029_vm1, %v3028_v30  ;;  %2760 = vmatprep.subr.bf16.mxu1 %v3028_v30  ;;  %v2722_v1 = vpop.f32.mrb[8].mxu1  ;;  %v3172_v3 = vpop.f32.mrb[8].mxu0  ;;  %v935_v56 = vsel %vm285_vm0, %v658_v46, 0  ;;  %v2556_v46 = vld [vmem:[%s3351_s18] sm:$0xff]  }
  0xf8   : > { %2784 = vmatprep.subr.bf16.mxu0 %v3028_v30  ;;  %v491_v2 = vpop.f32.mrb[9].mxu1  ;;  %v376_v6 = vpop.f32.mrb[9].mxu0  ;;  %v500_v32 = vadd.f32 %v2722_v1, %v3140_v31  ;;  %v385_v57 = vadd.f32 %v3172_v3, %v3146_v39  ;;  %v1027_v1 = vsel %vm285_vm0, %v660_v61, 0 }
  0xf9   : > { %v3174_v7 = vpop.f32.mrb[10].mxu1  ;;  %v3178_v9 = vpop.f32.mrb[10].mxu0  ;;  %v492_v12 = vadd.f32 %v3140_v31, %v491_v2  ;;  %v377_v42 = vadd.f32 %v3146_v39, %v376_v6 }
  0xfa   : > { %v3176_v8 = vpop.f32.mrb[11].mxu1  ;;  %v3182_v13 = vpop.f32.mrb[11].mxu0  ;;  %v663_v44 = vpack.c.bf16 %v500_v32, %v500_v32  ;;  %v647_v62 = vpack.c.bf16 %v385_v57, %v385_v57  ;;  %v2558_v57 = vunpack.c.h.bf16 %v2556_v46 }
  0xfb   : > { %v661_v18 = vpack.c.bf16 %v492_v12, %v492_v12  ;;  %v645_v47 = vpack.c.bf16 %v377_v42, %v377_v42  ;;  %v495_v2 = vadd.f32 %v3140_v31, %v3176_v8  ;;  %v380_v17 = vadd.f32 %v3146_v39, %v3182_v13 }
  0xfc   : > { %v1165_v40 = vsel %vm285_vm0, %v663_v44, 0  ;;  %v388_v13 = vadd.f32 %v3178_v9, %v3146_v39 }
  0xfd   : > { %2757 = vmatmul.mubr.msk.bf16.vlgmr.msra.gmra.mrb[20].mxu1 %vm285_vm0, %v638_v11  ;;  %2775 = vmatmul.mubr.msk.bf16.vlgmr.msra.gmra.mrb[32].mxu0 %vm285_vm0, %v641_v5  ;;  %v1073_v33 = vsel %vm285_vm0, %v661_v18, 0  ;;  %v662_v6 = vpack.c.bf16 %v495_v2, %v495_v2  ;;  %v644_v11 = vpack.c.bf16 %v372_v4, %v372_v4  ;;  %v2587_v4 = vld [vmem:[%s3351_s18 + $0x8] sm:$0xff]  }
  0xfe   : > { %2761 = vmatpush3.bf16.xpose.msra.mxu1 %v797_v14  ;;  %2785 = vmatpush3.bf16.xpose.msra.mxu0 %v981_v10  ;;  %v3269_v10 = vld [vmem:[%s3671_s2 + $0x2] ss:$0 sm:$0xff]  ;;  %v503_v14 = vadd.f32 %v3174_v7, %v3140_v31 }
  0xff   : > { %2762 = vmatprep.mubr.msk.bf16.mxu1 %vm3029_vm1, %v3028_v30  ;;  %2786 = vmatprep.mubr.msk.bf16.mxu0 %vm3029_vm1, %v3028_v30  ;;  %v2726_v19 = vpop.f32.mrb[12].mxu1  ;;  %v3196_v21 = vpop.f32.mrb[12].mxu0  ;;  %v1119_v15 = vsel %vm285_vm0, %v662_v6, 0 }
 0x100   : > { %2766 = vmatprep.subr.bf16.mxu1 %v3028_v30  ;;  %2796 = vmatprep.subr.bf16.mxu0 %v3028_v30  ;;  %v507_v20 = vpop.f32.mrb[13].mxu1  ;;  %v392_v24 = vpop.f32.mrb[13].mxu0  ;;  %v516_v0 = vadd.f32 %v2726_v19, %v3140_v31  ;;  %v401_v16 = vadd.f32 %v3196_v21, %v3146_v39  ;;  %v664_v7 = vpack.c.bf16 %v503_v14, %v503_v14 }
 0x101   : > { %v2727_v25 = vpop.f32.mrb[14].mxu1  ;;  %v2707_v29 = vpop.f32.mrb[14].mxu0  ;;  %v508_v51 = vadd.f32 %v3140_v31, %v507_v20  ;;  %v393_v3 = vadd.f32 %v3146_v39, %v392_v24  ;;  %v646_v19 = vpack.c.bf16 %v380_v17, %v380_v17 }
 0x102   : > { %v3199_v27 = vadd.f32 %v2727_v25, %v3140_v31  ;;  %v510_v28 = vpop.f32.mrb[15].mxu1  ;;  %v3207_v35 = vadd.f32 %v2707_v29, %v3146_v39  ;;  %v395_v36 = vpop.f32.mrb[15].mxu0  ;;  %v667_v5 = vpack.c.bf16 %v516_v0, %v516_v0  ;;  %v651_v18 = vpack.c.bf16 %v401_v16, %v401_v16 }
 0x103   : > { %v3204_v34 = vadd.f32 %v3140_v31, %v510_v28  ;;  %v3210_v37 = vadd.f32 %v3146_v39, %v395_v36  ;;  %v665_v60 = vpack.c.bf16 %v508_v51, %v508_v51  ;;  %v649_v8 = vpack.c.bf16 %v393_v3, %v393_v3  ;;  %v3364_v3 = vld [vmem:[%s3351_s18 + $0x18] sm:$0xff]  }
 0x104   : > { %v1349_v55 = vsel %vm285_vm0, %v667_v5, 0  ;;  %v1211_v21 = vsel %vm285_vm0, %v664_v7, 0  ;;  %v668_v39 = vpack.c.bf16 %v3199_v27, %v3199_v27  ;;  %v652_v27 = vpack.c.bf16 %v3207_v35, %v3207_v35 }
 0x105   : > { %2763 = vmatmul.mubr.msk.bf16.vlgmr.msra.gmra.mrb[24].mxu1 %vm285_vm0, %v639_v26  ;;  %2787 = vmatmul.mubr.msk.bf16.vlgmr.msra.gmra.mrb[36].mxu0 %vm285_vm0, %v643_v23  ;;  %v1257_v58 = vsel %vm285_vm0, %v665_v60, 0  ;;  %v666_v22 = vpack.c.bf16 %v3204_v34, %v3204_v34  ;;  %v648_v23 = vpack.c.bf16 %v388_v13, %v388_v13  ;;  %v650_v9 = vpack.c.bf16 %v3210_v37, %v3210_v37 }
 0x106   : > { %2767 = vmatpush3.bf16.xpose.msra.mxu1 %v843_v38  ;;  %2797 = vmatpush3.bf16.xpose.msra.mxu0 %v1073_v33  ;;  %v1395_v26 = vsel %vm285_vm0, %v668_v39, 0 }
 0x107   : > { %2768 = vmatprep.mubr.msk.bf16.mxu1 %vm3029_vm1, %v3028_v30  ;;  %2798 = vmatprep.mubr.msk.bf16.mxu0 %vm3029_vm1, %v3028_v30  ;;  %v3225_v45 = vpop.f32.mrb[16].mxu0  ;;  %v1303_v24 = vsel %vm285_vm0, %v666_v22, 0 }
 0x108   : > { %2778 = vmatprep.subr.bf16.mxu1 %v3028_v30  ;;  %2808 = vmatprep.subr.bf16.mxu0 %v3028_v30  ;;  %v574_v48 = vpop.f32.mrb[17].mxu0 }
 0x109   : > { %v3227_v49 = vpop.f32.mrb[18].mxu0  ;;  %v575_v12 = vadd.f32 %v3269_v10, %v574_v48 }
 0x10a   : > { %v3231_v52 = vpop.f32.mrb[19].mxu0 }
 0x10b   : > { %v1630_v31 = vpack.c.bf16 %v575_v12, %v575_v12  ;;  %v578_v25 = vadd.f32 %v3269_v10, %v3231_v52  ;;  %v2588_v52 = vld [vmem:[%s3351_s18 + $0x10] sm:$0xff]   ;;  %v2561_v12 = vunpack.c.l.bf16 %v2587_v4 }
 0x10c   : > { %v2565_v59 = vunpack.c.l.bf16 %v2588_v52 }
 0x10d   : > { %2769 = vmatmul.mubr.msk.bf16.vlgmr.msra.gmra.mrb[28].mxu1 %vm285_vm0, %v640_v50  ;;  %2799 = vmatmul.mubr.msk.bf16.vlgmr.msra.gmra.mrb[40].mxu0 %vm285_vm0, %v645_v47  ;;  %v1651_v20 = vsel %vm1649_vm2, %v1630_v31, 0  ;;  %v1631_v28 = vpack.c.bf16 %v578_v25, %v578_v25  ;;  %v2557_v47 = vunpack.c.l.bf16 %v2556_v46 }
 0x10e   : > { %2779 = vmatpush3.bf16.xpose.msra.mxu1 %v935_v56  ;;  %2809 = vmatpush3.bf16.xpose.msra.mxu0 %v1165_v40 }
 0x10f   : > { %2780 = vmatprep.mubr.msk.bf16.mxu1 %vm3029_vm1, %v3028_v30  ;;  %2810 = vmatprep.mubr.msk.bf16.mxu0 %vm3029_vm1, %v3028_v30  ;;  %v3248_v53 = vpop.f32.mrb[20].mxu0  ;;  %v1697_v29 = vsel %vm1649_vm2, %v1631_v28, 0 }
 0x110   : > { %2790 = vmatprep.subr.bf16.mxu1 %v3028_v30  ;;  %2820 = vmatprep.subr.bf16.mxu0 %v3028_v30  ;;  %v3325_v32 = vpop.f32.mrb[21].mxu0 }
 0x111   : > { %v3327_v33 = vpop.f32.mrb[22].mxu0 }
 0x112   : > { %v3329_v34 = vpop.f32.mrb[23].mxu0 }
 0x115   : > { %2781 = vmatmul.mubr.msk.bf16.vlgmr.msra.gmra.mrb[32].mxu1 %vm285_vm0, %v642_v63  ;;  %2811 = vmatmul.mubr.msk.bf16.vlgmr.msra.gmra.mrb[44].mxu0 %vm285_vm0, %v647_v62 }
 0x116   : > { %2791 = vmatpush3.bf16.xpose.msra.mxu1 %v1027_v1  ;;  %2821 = vmatpush3.bf16.xpose.msra.mxu0 %v1257_v58 }
 0x117   : > { %2792 = vmatprep.mubr.msk.bf16.mxu1 %vm3029_vm1, %v3028_v30  ;;  %2822 = vmatprep.mubr.msk.bf16.mxu0 %vm3029_vm1, %v3028_v30  ;;  %v3331_v36 = vpop.f32.mrb[24].mxu0 }
 0x118   : > { %2802 = vmatprep.subr.bf16.mxu1 %v3028_v30  ;;  %2832 = vmatprep.subr.bf16.mxu0 %v3028_v30  ;;  %v3333_v35 = vpop.f32.mrb[25].mxu0 }
 0x119   : > { %v3335_v37 = vpop.f32.mrb[26].mxu0 }
 0x11a   : > { %v3337_v38 = vpop.f32.mrb[27].mxu0 }
 0x11d   : > { %2793 = vmatmul.mubr.msk.bf16.vlgmr.msra.gmra.mrb[36].mxu1 %vm285_vm0, %v644_v11  ;;  %2823 = vmatmul.mubr.msk.bf16.vlgmr.msra.gmra.mrb[48].mxu0 %vm285_vm0, %v649_v8  ;;  %v2569_v11 = vunpack.c.l.bf16 %v3364_v3 }
 0x11e   : > { %2803 = vmatpush3.bf16.xpose.msra.mxu1 %v1119_v15  ;;  %2833 = vmatpush3.bf16.xpose.msra.mxu0 %v1349_v55 }
 0x11f   : > { %2804 = vmatprep.mubr.msk.bf16.mxu1 %vm3029_vm1, %v3028_v30  ;;  %2834 = vmatprep.mubr.msk.bf16.mxu0 %vm3029_vm1, %v3028_v30  ;;  %v3339_v41 = vpop.f32.mrb[28].mxu0 }
 0x120   : > { %2814 = vmatprep.subr.bf16.mxu1 %v3028_v30  ;;  %2844 = vmatprep.subr.bf16.mxu0 %v3028_v30  ;;  %v3341_v42 = vpop.f32.mrb[29].mxu0 }
 0x121   : > { %v3343_v43 = vpop.f32.mrb[30].mxu0 }
 0x122   : > { %v3345_v44 = vpop.f32.mrb[31].mxu0 }
 0x125   : > { %2805 = vmatmul.mubr.msk.bf16.vlgmr.msra.gmra.mrb[40].mxu1 %vm285_vm0, %v646_v19  ;;  %2835 = vmatmul.mubr.msk.bf16.vlgmr.msra.gmra.mrb[52].mxu0 %vm285_vm0, %v651_v18 }
 0x126   : > { %2815 = vmatpush3.bf16.xpose.msra.mxu1 %v1211_v21  ;;  %2816 = vmatprep.mubr.msk.bf16.mxu1 %vm3029_vm1, %v3028_v30 }
 0x127   : > { %2826 = vmatprep.subr.bf16.mxu1 %v3028_v30  ;;  %2845 = vmatpush3.bf16.msra.mxu0 %v1651_v20  ;;  %v3377_v20 = vld [vmem:[%s3351_s18 + $0x20] sm:$0xff]  }
 0x128   : > { %2846 = vmatprep.mubr.msk.bf16.mxu0 %vm3029_vm1, %v3028_v30  ;;  %2856 = vmatprep.subr.bf16.mxu0 %v3028_v30  ;;  %v2573_v39 = vunpack.c.l.bf16 %v3377_v20 }
 0x12d   : > { %2817 = vmatmul.mubr.msk.bf16.vlgmr.msra.gmra.mrb[44].mxu1 %vm285_vm0, %v648_v23 }
 0x12e   : > { %2827 = vmatpush3.bf16.xpose.msra.mxu1 %v1303_v24  ;;  %2828 = vmatprep.mubr.msk.bf16.mxu1 %vm3029_vm1, %v3028_v30  ;;  %v2562_v24 = vunpack.c.h.bf16 %v2587_v4 }
 0x12f   : > { %2838 = vmatprep.subr.bf16.mxu1 %v3028_v30 }
 0x135   : > { %2829 = vmatmul.mubr.msk.bf16.vlgmr.msra.gmra.mrb[48].mxu1 %vm285_vm0, %v650_v9 }
 0x136   : > { %2839 = vmatpush3.bf16.xpose.msra.mxu1 %v1395_v26  ;;  %2840 = vmatprep.mubr.msk.bf16.mxu1 %vm3029_vm1, %v3028_v30 }
 0x137   : > { %2850 = vmatprep.subr.bf16.mxu1 %v3028_v30 }
 0x13d   : > { %2841 = vmatmul.mubr.msk.bf16.vlgmr.msra.gmra.mrb[52].mxu1 %vm285_vm0, %v652_v27 }
 0x13e   : > { %2851 = vmatpush3.bf16.msra.mxu1 %v1697_v29  ;;  %2852 = vmatprep.mubr.msk.bf16.mxu1 %vm3029_vm1, %v3028_v30 }
 0x13f   : > { %2862 = vmatprep.subr.bf16.mxu1 %v3028_v30 }
 0x1c8   : > { %v741_v48 = vpop.f32.mrb[16].mxu1 }
 0x1c9   : > { %v3354_v50 = vadd.f32 %v2557_v47, %v741_v48  ;;  %v2752_v40 = vpop.f32.mrb[17].mxu1  ;;  %v2591_v48 = vld [vmem:[%s3351_s18 + $0x28] sm:$0xff]  }
 0x1ca   : > { %v744_v51 = vpop.f32.mrb[18].mxu1 }
 0x1cb   : > { %v1438_v54 = vsel %vm1437_vm3, %v3354_v50, -inf  ;;  %v2753_v56 = vpop.f32.mrb[19].mxu1 }
 0x1cc   : > { %1439 = vmax.xlane.f32.xlu0 %v1438_v54 }
 0x1d0   : > { %v787_v60 = vpop.f32.mrb[20].mxu1  ;;  %v925_v61 = vpop.f32.mrb[32].mxu0 }
 0x1d1   : > { %v3359_v62 = vadd.f32 %v2558_v57, %v787_v60  ;;  %v3361_v63 = vadd.f32 %v2565_v59, %v925_v61  ;;  %v2758_v0 = vpop.f32.mrb[21].mxu1  ;;  %v2776_v58 = vpop.f32.mrb[33].mxu0  ;;  %v2566_v57 = vunpack.c.h.bf16 %v2588_v52  ;;  %v2577_v59 = vunpack.c.l.bf16 %v2591_v48 }
 0x1d2   : > { %v790_v1 = vpop.f32.mrb[22].mxu1  ;;  %v928_v2 = vpop.f32.mrb[34].mxu0 }
 0x1d3   : > { %v1441_v5 = vsel %vm1437_vm3, %v3359_v62, -inf  ;;  %v2759_v6 = vpop.f32.mrb[23].mxu1  ;;  %v2777_v8 = vpop.f32.mrb[35].mxu0  ;;  %v1450_v55 = vsel %vm1437_vm3, %v3361_v63, -inf }
 0x1d4   : > { %1442 = vmax.xlane.f32.xlu0 %v1441_v5  ;;  %v2592_v6 = vld [vmem:[%s3351_s18 + $0x30] sm:$0xff]  }
 0x1d8   : > { %v1017_v14 = vpop.f32.mrb[36].mxu0  ;;  %1451 = vmax.xlane.f32.xlu0 %v1450_v55  ;;  %v833_v15 = vpop.f32.mrb[24].mxu1 }
 0x1d9   : > { %v3372_v16 = vadd.f32 %v2569_v11, %v1017_v14  ;;  %v3374_v17 = vadd.f32 %v2561_v12, %v833_v15  ;;  %v2764_v31 = vpop.f32.mrb[25].mxu1  ;;  %v2788_v7 = vpop.f32.mrb[37].mxu0  ;;  %v2570_v12 = vunpack.c.h.bf16 %v3364_v3  ;;  %v2581_v14 = vunpack.c.l.bf16 %v2592_v6 }
 0x1da   : > { %v836_v18 = vpop.f32.mrb[26].mxu1  ;;  %v1020_v19 = vpop.f32.mrb[38].mxu0 }
 0x1db   : > { %v1456_v21 = vsel %vm1437_vm3, %v3372_v16, -inf  ;;  %v1444_v13 = vsel %vm1437_vm3, %v3374_v17, -inf  ;;  %v2765_v22 = vpop.f32.mrb[27].mxu1  ;;  %v2789_v23 = vpop.f32.mrb[39].mxu0 }
 0x1dc   : > { %1457 = vmax.xlane.f32.xlu0 %v1456_v21  ;;  %1445 = vmax.xlane.f32.xlu1 %v1444_v13  ;;  %v2593_v23 = vld [vmem:[%s3351_s18 + $0x38] sm:$0xff]  }
 0x1e0   : > { %v879_v9 = vpop.f32.mrb[28].mxu1  ;;  %v1109_v25 = vpop.f32.mrb[40].mxu0 }
 0x1e1   : > { %v3384_v26 = vadd.f32 %v2562_v24, %v879_v9  ;;  %v3386_v28 = vadd.f32 %v2573_v39, %v1109_v25  ;;  %v2770_v27 = vpop.f32.mrb[29].mxu1  ;;  %v2800_v29 = vpop.f32.mrb[41].mxu0  ;;  %v2574_v25 = vunpack.c.h.bf16 %v3377_v20  ;;  %v2578_v20 = vunpack.c.h.bf16 %v2591_v48 }
 0x1e2   : > { %v882_v46 = vpop.f32.mrb[30].mxu1  ;;  %v1112_v47 = vpop.f32.mrb[42].mxu0  ;;  %v2585_v27 = vunpack.c.l.bf16 %v2593_v23 }
 0x1e3   : > { %v2771_v40 = vpop.f32.mrb[31].mxu1  ;;  %v1462_v51 = vsel %vm1437_vm3, %v3386_v28, -inf  ;;  %v1447_v54 = vsel %vm1437_vm3, %v3384_v26, -inf  ;;  %v2801_v56 = vpop.f32.mrb[43].mxu0 }
 0x1e4   : > { %1463 = vmax.xlane.f32.xlu0 %v1462_v51  ;;  %1448 = vmax.xlane.f32.xlu1 %v1447_v54 }
 0x1e8   : > { %v971_v60 = vpop.f32.mrb[32].mxu1  ;;  %v1201_v61 = vpop.f32.mrb[44].mxu0 }
 0x1e9   : > { %v3393_v0 = vadd.f32 %v2566_v57, %v971_v60  ;;  %v3395_v58 = vadd.f32 %v2577_v59, %v1201_v61  ;;  %v2782_v1 = vpop.f32.mrb[33].mxu1  ;;  %v2812_v2 = vpop.f32.mrb[45].mxu0 }
 0x1ea   : > { %v974_v4 = vpop.f32.mrb[34].mxu1  ;;  %v1204_v5 = vpop.f32.mrb[46].mxu0 }
 0x1eb   : > { %v1468_v8 = vsel %vm1437_vm3, %v3395_v58, -inf  ;;  %v1453_v11 = vsel %vm1437_vm3, %v3393_v0, -inf  ;;  %v2783_v52 = vpop.f32.mrb[35].mxu1  ;;  %v2813_v55 = vpop.f32.mrb[47].mxu0 }
 0x1ec   : > { %1469 = vmax.xlane.f32.xlu0 %v1468_v8  ;;  %1454 = vmax.xlane.f32.xlu1 %v1453_v11  ;;  %v2582_v55 = vunpack.c.h.bf16 %v2592_v6 }
 0x1f0   : > { %v1063_v15 = vpop.f32.mrb[36].mxu1  ;;  %v1293_v31 = vpop.f32.mrb[48].mxu0 }
 0x1f1   : > { %v3403_v7 = vadd.f32 %v2570_v12, %v1063_v15  ;;  %v3405_v18 = vadd.f32 %v2581_v14, %v1293_v31  ;;  %v2794_v19 = vpop.f32.mrb[37].mxu1  ;;  %v2824_v21 = vpop.f32.mrb[49].mxu0 }
 0x1f2   : > { %v1066_v13 = vpop.f32.mrb[38].mxu1  ;;  %v1296_v22 = vpop.f32.mrb[50].mxu0  ;;  %v2586_v21 = vunpack.c.h.bf16 %v2593_v23 }
 0x1f3   : > { %v1474_v24 = vsel %vm1437_vm3, %v3405_v18, -inf  ;;  %v1459_v39 = vsel %vm1437_vm3, %v3403_v7, -inf  ;;  %v2795_v9 = vpop.f32.mrb[39].mxu1  ;;  %v2825_v3 = vpop.f32.mrb[51].mxu0 }
 0x1f4   : > { %1475 = vmax.xlane.f32.xlu0 %v1474_v24  ;;  %1460 = vmax.xlane.f32.xlu1 %v1459_v39 }
 0x1f8   : > { %v1155_v29 = vpop.f32.mrb[40].mxu1  ;;  %v1385_v46 = vpop.f32.mrb[52].mxu0 }
 0x1f9   : > { %v3413_v47 = vadd.f32 %v2574_v25, %v1155_v29  ;;  %v3415_v40 = vadd.f32 %v2585_v27, %v1385_v46  ;;  %v2806_v51 = vpop.f32.mrb[41].mxu1  ;;  %v2836_v54 = vpop.f32.mrb[53].mxu0 }
 0x1fa   : > { %v1158_v56 = vpop.f32.mrb[42].mxu1  ;;  %v1388_v57 = vpop.f32.mrb[54].mxu0 }
 0x1fb   : > { %v1480_v59 = vsel %vm1437_vm3, %v3415_v40, -inf  ;;  %v1465_v60 = vsel %vm1437_vm3, %v3413_v47, -inf  ;;  %v2807_v61 = vpop.f32.mrb[43].mxu1  ;;  %v2837_v1 = vpop.f32.mrb[55].mxu0 }
 0x1fc   : > { %1481 = vmax.xlane.f32.xlu0 %v1480_v59  ;;  %1466 = vmax.xlane.f32.xlu1 %v1465_v60 }
 0x200   : > { %v1247_v2 = vpop.f32.mrb[44].mxu1 }
 0x201   : > { %v3421_v4 = vadd.f32 %v2578_v20, %v1247_v2  ;;  %v2818_v5 = vpop.f32.mrb[45].mxu1 }
 0x202   : > { %v1250_v8 = vpop.f32.mrb[46].mxu1 }
 0x203   : > { %v1471_v11 = vsel %vm1437_vm3, %v3421_v4, -inf  ;;  %v2819_v52 = vpop.f32.mrb[47].mxu1 }
 0x204   : > { %1472 = vmax.xlane.f32.xlu1 %v1471_v11 }
 0x208   : > { %v1339_v12 = vpop.f32.mrb[48].mxu1 }
 0x209   : > { %v3425_v14 = vadd.f32 %v2582_v55, %v1339_v12  ;;  %v2830_v15 = vpop.f32.mrb[49].mxu1 }
 0x20a   : > { %v1342_v31 = vpop.f32.mrb[50].mxu1 }
 0x20b   : > { %v1477_v19 = vsel %vm1437_vm3, %v3425_v14, -inf  ;;  %v2831_v48 = vpop.f32.mrb[51].mxu1 }
 0x20c   : > { %1478 = vmax.xlane.f32.xlu1 %v1477_v19 }
 0x210   : > { %v1431_v13 = vpop.f32.mrb[52].mxu1 }
 0x211   : > { %v3429_v22 = vadd.f32 %v2586_v21, %v1431_v13  ;;  %v2842_v24 = vpop.f32.mrb[53].mxu1 }
 0x212   : > { %v1434_v39 = vpop.f32.mrb[54].mxu1 }
 0x213   : > { %v1483_v9 = vsel %vm1437_vm3, %v3429_v22, -inf  ;;  %v2843_v6 = vpop.f32.mrb[55].mxu1 }
 0x214   : > { %1484 = vmax.xlane.f32.xlu1 %v1483_v9 }
 0x259   : > { %v1440_v3 = vpop.xlane.xlu0 %1439 }
 0x25a   : > { %v1486_v25 = vsub.f32 %v3354_v50, %v1440_v3 }
 0x25c   : > { %v1502_v27 = vmul.f32 1.442695, %v1486_v25 }
 0x25e   : > { %2956 = vpow2.f32 %v1502_v27 }
 0x261   : > { %v1443_v29 = vpop.xlane.xlu0 %1442 }
 0x262   : > { %v1487_v46 = vsub.f32 %v3359_v62, %v1443_v29 }
 0x264   : > { %v1504_v51 = vmul.f32 1.442695, %v1487_v46 }
 0x265   : > { %v1452_v23 = vpop.xlane.xlu0 %1451 }
 0x266   : > { %2958 = vpow2.f32 %v1504_v51  ;;  %v1490_v56 = vsub.f32 %v3361_v63, %v1452_v23 }
 0x268   : > { %v3435_v54 = vpop.eup %2956  ;;  %v1510_v1 = vmul.f32 1.442695, %v1490_v56 }
 0x269   : > { %v1446_v57 = vpop.xlane.xlu1 %1445  ;;  %v1534_v59 = vsel %vm1437_vm3, %v3435_v54, 0.0  ;;  %v1458_v60 = vpop.xlane.xlu0 %1457 }
 0x26a   : > { %v1488_v61 = vsub.f32 %v3374_v17, %v1446_v57  ;;  %1535 = vadd.xlane.f32.xlu0 %v1534_v59  ;;  %v1492_v20 = vsub.f32 %v3372_v16, %v1458_v60 }
 0x26c   : > { %v1506_v50 = vmul.f32 1.442695, %v1488_v61  ;;  %v1514_v2 = vmul.f32 1.442695, %v1492_v20 }
 0x26e   : > { %2960 = vpow2.f32 %v1506_v50 }
 0x26f   : > { %2962 = vpow2.f32 %v1510_v1 }
 0x270   : > { %v3442_v62 = vpop.eup %2958  ;;  %2964 = vpow2.f32 %v1514_v2 }
 0x271   : > { %v1464_v5 = vpop.xlane.xlu0 %1463  ;;  %v1449_v8 = vpop.xlane.xlu1 %1448  ;;  %v1537_v63 = vsel %vm1437_vm3, %v3442_v62, 0.0 }
 0x272   : > { %v1494_v11 = vsub.f32 %v3386_v28, %v1464_v5  ;;  %v1489_v52 = vsub.f32 %v3384_v26, %v1449_v8  ;;  %1538 = vadd.xlane.f32.xlu1 %v1537_v63 }
 0x274   : > { %v1508_v17 = vmul.f32 1.442695, %v1489_v52  ;;  %v1518_v55 = vmul.f32 1.442695, %v1494_v11 }
 0x276   : > { %2966 = vpow2.f32 %v1508_v17 }
 0x277   : > { %2968 = vpow2.f32 %v1518_v55 }
 0x278   : > { %v3448_v16 = vpop.eup %2960 }
 0x279   : > { %v1470_v12 = vpop.xlane.xlu0 %1469  ;;  %v1455_v15 = vpop.xlane.xlu1 %1454  ;;  %v1540_v48 = vsel %vm1437_vm3, %v3448_v16, 0.0 }
 0x27a   : > { %v1496_v31 = vsub.f32 %v3395_v58, %v1470_v12  ;;  %v1491_v19 = vsub.f32 %v3393_v0, %v1455_v15  ;;  %v3454_v28 = vpop.eup %2962  ;;  %1541 = vadd.xlane.f32.xlu0 %v1540_v48 }
 0x27b   : > { %v1546_v13 = vsel %vm1437_vm3, %v3454_v28, 0.0  ;;  %v3458_v24 = vpop.eup %2964 }
 0x27c   : > { %v1522_v26 = vmul.f32 1.442695, %v1496_v31  ;;  %v1512_v21 = vmul.f32 1.442695, %v1491_v19  ;;  %v1552_v3 = vsel %vm1437_vm3, %v3458_v24, 0.0 }
 0x27e   : > { %2970 = vpow2.f32 %v1522_v26  ;;  %1547 = vadd.xlane.f32.xlu0 %v1546_v13 }
 0x27f   : > { %2972 = vpow2.f32 %v1512_v21 }
 0x280   : > { %v3460_v39 = vpop.eup %2966 }
 0x281   : > { %v1476_v58 = vpop.xlane.xlu0 %1475  ;;  %v1461_v0 = vpop.xlane.xlu1 %1460  ;;  %v1543_v25 = vsel %vm1437_vm3, %v3460_v39, 0.0 }
 0x282   : > { %v1498_v9 = vsub.f32 %v3405_v18, %v1476_v58  ;;  %v1493_v6 = vsub.f32 %v3403_v7, %v1461_v0  ;;  %v3468_v27 = vpop.eup %2968  ;;  %1553 = vadd.xlane.f32.xlu0 %v1552_v3  ;;  %1544 = vadd.xlane.f32.xlu1 %v1543_v25 }
 0x283   : > { %v1558_v51 = vsel %vm1437_vm3, %v3468_v27, 0.0 }
 0x284   : > { %v1526_v29 = vmul.f32 1.442695, %v1498_v9  ;;  %v1516_v46 = vmul.f32 1.442695, %v1493_v6 }
 0x286   : > { %2974 = vpow2.f32 %v1526_v29  ;;  %1559 = vadd.xlane.f32.xlu0 %v1558_v51 }
 0x287   : > { %2976 = vpow2.f32 %v1516_v46 }
 0x288   : > { %v3472_v18 = vpop.eup %2970 }
 0x289   : > { %v3474_v7 = vpop.eup %2972  ;;  %v1482_v23 = vpop.xlane.xlu0 %1481  ;;  %v1564_v57 = vsel %vm1437_vm3, %v3472_v18, 0.0 }
 0x28a   : > { %v1467_v56 = vpop.xlane.xlu1 %1466  ;;  %v1500_v59 = vsub.f32 %v3415_v40, %v1482_v23  ;;  %v1549_v61 = vsel %vm1437_vm3, %v3474_v7, 0.0  ;;  %1565 = vadd.xlane.f32.xlu0 %v1564_v57  ;;  %v586_v23 = vadd.f32 %v3227_v49, %v3269_v10  ;;  %v591_v49 = vadd.f32 %v3269_v10, %v3325_v32 }
 0x28b   : > { %v1495_v60 = vsub.f32 %v3413_v47, %v1467_v56  ;;  %1550 = vadd.xlane.f32.xlu1 %v1549_v61 }
 0x28c   : > { %v1530_v50 = vmul.f32 1.442695, %v1500_v59  ;;  %v1633_v57 = vpack.c.bf16 %v586_v23, %v586_v23 }
 0x28d   : > { %v1520_v1 = vmul.f32 1.442695, %v1495_v60 }
 0x28e   : > { %2978 = vpow2.f32 %v1530_v50  ;;  %v1789_v61 = vsel %vm1649_vm2, %v1633_v57, 0 }
 0x28f   : > { %2980 = vpow2.f32 %v1520_v1 }
 0x290   : > { %v3482_v20 = vpop.eup %2974 }
 0x291   : > { %v3484_v2 = vpop.eup %2976  ;;  %v1473_v5 = vpop.xlane.xlu1 %1472  ;;  %v1570_v8 = vsel %vm1437_vm3, %v3482_v20, 0.0 }
 0x292   : > { %v1497_v40 = vsub.f32 %v3421_v4, %v1473_v5  ;;  %1571 = vadd.xlane.f32.xlu0 %v1570_v8  ;;  %v1555_v47 = vsel %vm1437_vm3, %v3484_v2, 0.0  ;;  %v1634_v5 = vpack.c.bf16 %v591_v49, %v591_v49 }
 0x293   : > { %1556 = vadd.xlane.f32.xlu1 %v1555_v47 }
 0x294   : > { %v1524_v63 = vmul.f32 1.442695, %v1497_v40  ;;  %v1835_v32 = vsel %vm1649_vm2, %v1634_v5, 0 }
 0x296   : > { %2982 = vpow2.f32 %v1524_v63  ;;  %v599_v63 = vadd.f32 %v3248_v53, %v3269_v10 }
 0x298   : > { %v3491_v11 = vpop.eup %2978  ;;  %v1636_v53 = vpack.c.bf16 %v599_v63, %v599_v63 }
 0x299   : > { %v3493_v52 = vpop.eup %2980  ;;  %v1479_v17 = vpop.xlane.xlu1 %1478  ;;  %v1576_v55 = vsel %vm1437_vm3, %v3491_v11, 0.0 }
 0x29a   : > { %v1499_v12 = vsub.f32 %v3425_v14, %v1479_v17  ;;  %1577 = vadd.xlane.f32.xlu0 %v1576_v55  ;;  %v1561_v4 = vsel %vm1437_vm3, %v3493_v52, 0.0  ;;  %v594_v55 = vadd.f32 %v3269_v10, %v3329_v34  ;;  %v1927_v34 = vsel %vm1649_vm2, %v1636_v53, 0 }
 0x29b   : > { %1562 = vadd.xlane.f32.xlu1 %v1561_v4 }
 0x29c   : > { %v1528_v15 = vmul.f32 1.442695, %v1499_v12 }
 0x29e   : > { %2984 = vpow2.f32 %v1528_v15  ;;  %v1635_v15 = vpack.c.bf16 %v594_v55, %v594_v55  ;;  %v631_v55 = vadd.f32 %v3339_v41, %v3269_v10 }
 0x2a0   : > { %v3500_v31 = vpop.eup %2982 }
 0x2a1   : > { %v1485_v19 = vpop.xlane.xlu1 %1484  ;;  %v1567_v48 = vsel %vm1437_vm3, %v3500_v31, 0.0 }
 0x2a2   : > { %v1501_v26 = vsub.f32 %v3429_v22, %v1485_v19  ;;  %1568 = vadd.xlane.f32.xlu1 %v1567_v48  ;;  %v583_v22 = vadd.f32 %v3225_v45, %v3269_v10 }
 0x2a4   : > { %v1532_v21 = vmul.f32 1.442695, %v1501_v26  ;;  %v1632_v25 = vpack.c.bf16 %v583_v22, %v583_v22 }
 0x2a6   : > { %2986 = vpow2.f32 %v1532_v21  ;;  %v1743_v51 = vsel %vm1649_vm2, %v1632_v25, 0 }
 0x2a8   : > { %v3505_v13 = vpop.eup %2984 }
 0x2a9   : > { %v1573_v14 = vsel %vm1437_vm3, %v3505_v13, 0.0 }
 0x2aa   : > { %1574 = vadd.xlane.f32.xlu1 %v1573_v14  ;;  %v607_v14 = vadd.f32 %v3269_v10, %v3333_v35 }
 0x2b0   : > { %v3509_v58 = vpop.eup %2986 }
 0x2b1   : > { %v1579_v0 = vsel %vm1437_vm3, %v3509_v58, 0.0 }
 0x2b2   : > { %1580 = vadd.xlane.f32.xlu1 %v1579_v0  ;;  %v602_v0 = vadd.f32 %v3327_v33, %v3269_v10  ;;  %v1638_v33 = vpack.c.bf16 %v607_v14, %v607_v14 }
 0x2f7   : > { %v1536_v9 = vpop.xlane.xlu0 %1535 }
 0x2f8   : > { %2988 = vrcp.f32 %v1536_v9  ;;  %v1881_v9 = vsel %vm1649_vm2, %v1635_v15, 0  ;;  %v1644_v15 = vpack.c.bf16 %v631_v55, %v631_v55 }
 0x2ff   : > { %v1539_v6 = vpop.xlane.xlu1 %1538 }
 0x300   : > { %2990 = vrcp.f32 %v1539_v6  ;;  %v1637_v6 = vpack.c.bf16 %v602_v0, %v602_v0 }
 0x302   : > { %v2989_v3 = vpop.eup %2988 }
 0x303   : > { %v1598_v29 = vmul.f32 %v2989_v3, %v3435_v54 }
 0x305   : > { %v1614_v46 = vpack.c.bf16 %v1598_v29, %v1598_v29 }
 0x307   : > { %2847 = vmatmul.mubr.msk.bf16.vlgmr.msra.gmra.mrb[56].mxu0 %vm1437_vm3, %v1614_v46  ;;  %v1542_v56 = vpop.xlane.xlu0 %1541  ;;  %v615_v46 = vadd.f32 %v3331_v36, %v3269_v10 }
 0x308   : > { %2857 = vmatpush3.bf16.msra.mxu0 %v1743_v51  ;;  %2858 = vmatprep.mubr.msk.bf16.mxu0 %vm3029_vm1, %v3028_v30  ;;  %2992 = vrcp.f32 %v1542_v56  ;;  %v2019_v51 = vsel %vm1649_vm2, %v1638_v33, 0  ;;  %v1973_v56 = vsel %vm1649_vm2, %v1637_v6, 0 }
 0x309   : > { %2868 = vmatprep.subr.bf16.mxu0 %v3028_v30 }
 0x30a   : > { %v2991_v45 = vpop.eup %2990 }
 0x30b   : > { %v1599_v54 = vmul.f32 %v2991_v45, %v3442_v62  ;;  %v1548_v59 = vpop.xlane.xlu0 %1547  ;;  %v610_v45 = vadd.f32 %v3269_v10, %v3337_v38 }
 0x30c   : > { %2994 = vrcp.f32 %v1548_v59 }
 0x30d   : > { %v1615_v60 = vpack.c.bf16 %v1599_v54, %v1599_v54  ;;  %v1640_v54 = vpack.c.bf16 %v615_v46, %v615_v46  ;;  %v1639_v59 = vpack.c.bf16 %v610_v45, %v610_v45 }
 0x30f   : > { %2853 = vmatmul.mubr.msk.bf16.vlgmr.msra.gmra.mrb[56].mxu1 %vm1437_vm3, %v1615_v60  ;;  %v1545_v50 = vpop.xlane.xlu1 %1544  ;;  %v1554_v1 = vpop.xlane.xlu0 %1553 }
 0x310   : > { %2863 = vmatpush3.bf16.msra.mxu1 %v1789_v61  ;;  %2864 = vmatprep.mubr.msk.bf16.mxu1 %vm3029_vm1, %v3028_v30  ;;  %2996 = vrcp.f32 %v1545_v50  ;;  %v2111_v50 = vsel %vm1649_vm2, %v1640_v54, 0 }
 0x311   : > { %2874 = vmatprep.subr.bf16.mxu1 %v3028_v30  ;;  %2998 = vrcp.f32 %v1554_v1  ;;  %v623_v1 = vadd.f32 %v3269_v10, %v3341_v42 }
 0x312   : > { %v2993_v62 = vpop.eup %2992 }
 0x313   : > { %v1600_v8 = vmul.f32 %v2993_v62, %v3448_v16  ;;  %v1560_v12 = vpop.xlane.xlu0 %1559  ;;  %v618_v62 = vadd.f32 %v3335_v37, %v3269_v10  ;;  %v1642_v42 = vpack.c.bf16 %v623_v1, %v623_v1 }
 0x315   : > { %v1616_v40 = vpack.c.bf16 %v1600_v8, %v1600_v8 }
 0x316   : > { %v2995_v47 = vpop.eup %2994 }
 0x317   : > { %2859 = vmatmul.mubr.msk.bf16.vlgmr.msra.gmra.mrb[60].mxu0 %vm1437_vm3, %v1616_v40  ;;  %v1602_v16 = vmul.f32 %v2995_v47, %v3454_v28  ;;  %v1566_v22 = vpop.xlane.xlu0 %1565  ;;  %v1641_v47 = vpack.c.bf16 %v618_v62, %v618_v62 }
 0x318   : > { %v1551_v17 = vpop.xlane.xlu1 %1550  ;;  %2869 = vmatpush3.bf16.msra.mxu0 %v1835_v32  ;;  %2870 = vmatprep.mubr.msk.bf16.mxu0 %vm3029_vm1, %v3028_v30 }
 0x319   : > { %3000 = vrcp.f32 %v1551_v17  ;;  %2880 = vmatprep.subr.bf16.mxu0 %v3028_v30  ;;  %v1618_v48 = vpack.c.bf16 %v1602_v16, %v1602_v16  ;;  %v2203_v16 = vsel %vm1649_vm2, %v1642_v42, 0 }
 0x31a   : > { %v2997_v4 = vpop.eup %2996  ;;  %3002 = vrcp.f32 %v1560_v12  ;;  %v2157_v12 = vsel %vm1649_vm2, %v1641_v47, 0 }
 0x31b   : > { %v1601_v19 = vmul.f32 %v2997_v4, %v3460_v39  ;;  %v2999_v26 = vpop.eup %2998 }
 0x31c   : > { %v1604_v39 = vmul.f32 %v2999_v26, %v3458_v24 }
 0x31d   : > { %v1617_v21 = vpack.c.bf16 %v1601_v19, %v1601_v19 }
 0x31e   : > { %v1620_v25 = vpack.c.bf16 %v1604_v39, %v1604_v39 }
 0x31f   : > { %2871 = vmatmul.mubr.msk.bf16.vlgmr.msra.gmra.mrb[64].mxu0 %vm1437_vm3, %v1618_v48  ;;  %2865 = vmatmul.mubr.msk.bf16.vlgmr.msra.gmra.mrb[60].mxu1 %vm1437_vm3, %v1617_v21  ;;  %v1572_v57 = vpop.xlane.xlu0 %1571 }
 0x320   : > { %v1557_v28 = vpop.xlane.xlu1 %1556  ;;  %2881 = vmatpush3.bf16.msra.mxu0 %v1927_v34  ;;  %2875 = vmatpush3.bf16.msra.mxu1 %v1881_v9 }
 0x321   : > { %3004 = vrcp.f32 %v1557_v28  ;;  %2876 = vmatprep.mubr.msk.bf16.mxu1 %vm3029_vm1, %v3028_v30  ;;  %2882 = vmatprep.mubr.msk.bf16.mxu0 %vm3029_vm1, %v3028_v30 }
 0x322   : > { %2886 = vmatprep.subr.bf16.mxu1 %v3028_v30  ;;  %2892 = vmatprep.subr.bf16.mxu0 %v3028_v30  ;;  %3006 = vrcp.f32 %v1566_v22 }
 0x323   : > { %v3001_v35 = vpop.eup %3000 }
 0x324   : > { %v1603_v3 = vmul.f32 %v3001_v35, %v3474_v7  ;;  %v3003_v24 = vpop.eup %3002 }
 0x325   : > { %v1606_v7 = vmul.f32 %v3003_v24, %v3468_v27 }
 0x326   : > { %v1619_v29 = vpack.c.bf16 %v1603_v3, %v1603_v3 }
 0x327   : > { %2883 = vmatmul.mubr.msk.bf16.vlgmr.msra.gmra.mrb[68].mxu0 %vm1437_vm3, %v1620_v25  ;;  %v1622_v27 = vpack.c.bf16 %v1606_v7, %v1606_v7  ;;  %v1578_v8 = vpop.xlane.xlu0 %1577 }
 0x328   : > { %v1563_v23 = vpop.xlane.xlu1 %1562  ;;  %2893 = vmatpush3.bf16.msra.mxu0 %v2019_v51  ;;  %2877 = vmatmul.mubr.msk.bf16.vlgmr.msra.gmra.mrb[64].mxu1 %vm1437_vm3, %v1619_v29 }
 0x329   : > { %3008 = vrcp.f32 %v1563_v23  ;;  %2887 = vmatpush3.bf16.msra.mxu1 %v1973_v56  ;;  %2888 = vmatprep.mubr.msk.bf16.mxu1 %vm3029_vm1, %v3028_v30 }
 0x32a   : > { %2894 = vmatprep.mubr.msk.bf16.mxu0 %vm3029_vm1, %v3028_v30  ;;  %2898 = vmatprep.subr.bf16.mxu1 %v3028_v30  ;;  %3010 = vrcp.f32 %v1572_v57 }
 0x32b   : > { %v3005_v36 = vpop.eup %3004  ;;  %2904 = vmatprep.subr.bf16.mxu0 %v3028_v30 }
 0x32c   : > { %v1605_v38 = vmul.f32 %v3005_v36, %v3484_v2  ;;  %v3007_v61 = vpop.eup %3006  ;;  %v2065_v2 = vsel %vm1649_vm2, %v1639_v59, 0 }
 0x32d   : > { %v1608_v5 = vmul.f32 %v3007_v61, %v3472_v18 }
 0x32e   : > { %v1621_v60 = vpack.c.bf16 %v1605_v38, %v1605_v38 }
 0x32f   : > { %v1569_v49 = vpop.xlane.xlu1 %1568  ;;  %2895 = vmatmul.mubr.msk.bf16.vlgmr.msra.gmra.mrb[72].mxu0 %vm1437_vm3, %v1622_v27  ;;  %v1624_v18 = vpack.c.bf16 %v1608_v5, %v1608_v5 }
 0x330   : > { %3012 = vrcp.f32 %v1569_v49  ;;  %2889 = vmatmul.mubr.msk.bf16.vlgmr.msra.gmra.mrb[68].mxu1 %vm1437_vm3, %v1621_v60  ;;  %2905 = vmatpush3.bf16.msra.mxu0 %v2111_v50 }
 0x331   : > { %2899 = vmatpush3.bf16.msra.mxu1 %v2065_v2  ;;  %2900 = vmatprep.mubr.msk.bf16.mxu1 %vm3029_vm1, %v3028_v30  ;;  %3014 = vrcp.f32 %v1578_v8 }
 0x332   : > { %2906 = vmatprep.mubr.msk.bf16.mxu0 %vm3029_vm1, %v3028_v30  ;;  %2910 = vmatprep.subr.bf16.mxu1 %v3028_v30 }
 0x333   : > { %v3009_v40 = vpop.eup %3008  ;;  %2916 = vmatprep.subr.bf16.mxu0 %v3028_v30 }
 0x334   : > { %v1607_v37 = vmul.f32 %v3009_v40, %v3493_v52  ;;  %v3011_v32 = vpop.eup %3010  ;;  %v626_v52 = vadd.f32 %v3269_v10, %v3345_v44 }
 0x335   : > { %v1610_v53 = vmul.f32 %v3011_v32, %v3482_v20  ;;  %v2295_v20 = vsel %vm1649_vm2, %v1644_v15, 0 }
 0x336   : > { %v1623_v63 = vpack.c.bf16 %v1607_v37, %v1607_v37  ;;  %v1643_v44 = vpack.c.bf16 %v626_v52, %v626_v52 }
 0x337   : > { %v1575_v17 = vpop.xlane.xlu1 %1574  ;;  %2907 = vmatmul.mubr.msk.bf16.vlgmr.msra.gmra.mrb[76].mxu0 %vm1437_vm3, %v1624_v18  ;;  %v1626_v48 = vpack.c.bf16 %v1610_v53, %v1610_v53 }
 0x338   : > { %3016 = vrcp.f32 %v1575_v17  ;;  %2901 = vmatmul.mubr.msk.bf16.vlgmr.msra.gmra.mrb[72].mxu1 %vm1437_vm3, %v1623_v63  ;;  %2917 = vmatpush3.bf16.msra.mxu0 %v2203_v16  ;;  %v2249_v34 = vsel %vm1649_vm2, %v1643_v44, 0 }
 0x339   : > { %2911 = vmatpush3.bf16.msra.mxu1 %v2157_v12  ;;  %2912 = vmatprep.mubr.msk.bf16.mxu1 %vm3029_vm1, %v3028_v30 }
 0x33a   : > { %v3013_v4 = vpop.eup %3012  ;;  %2918 = vmatprep.mubr.msk.bf16.mxu0 %vm3029_vm1, %v3028_v30  ;;  %2922 = vmatprep.subr.bf16.mxu1 %v3028_v30 }
 0x33b   : > { %v1609_v41 = vmul.f32 %v3013_v4, %v3500_v31  ;;  %2928 = vmatprep.subr.bf16.mxu0 %v3028_v30  ;;  %v3015_v26 = vpop.eup %3014  ;;  %v634_v31 = vadd.f32 %v3343_v43, %v3269_v10 }
 0x33c   : > { %v1612_v28 = vmul.f32 %v3015_v26, %v3491_v11 }
 0x33d   : > { %v1625_v19 = vpack.c.bf16 %v1609_v41, %v1609_v41  ;;  %v1645_v10 = vpack.c.bf16 %v634_v31, %v634_v31 }
 0x33e   : > { %v1628_v9 = vpack.c.bf16 %v1612_v28, %v1612_v28 }
 0x33f   : > { %v1581_v21 = vpop.xlane.xlu1 %1580  ;;  %2919 = vmatmul.mubr.msk.bf16.vlgmr.msra.gmra.mrb[80].mxu0 %vm1437_vm3, %v1626_v48  ;;  %v2341_v39 = vsel %vm1649_vm2, %v1645_v10, 0 }
 0x340   : > { %3018 = vrcp.f32 %v1581_v21  ;;  %2913 = vmatmul.mubr.msk.bf16.vlgmr.msra.gmra.mrb[76].mxu1 %vm1437_vm3, %v1625_v19  ;;  %2929 = vmatpush3.bf16.msra.mxu0 %v2295_v20 }
 0x341   : > { %2923 = vmatpush3.bf16.msra.mxu1 %v2249_v34  ;;  %2924 = vmatprep.mubr.msk.bf16.mxu1 %vm3029_vm1, %v3028_v30 }
 0x342   : > { %v3017_v14 = vpop.eup %3016  ;;  %2930 = vmatprep.mubr.msk.bf16.mxu0 %vm3029_vm1, %v3028_v30  ;;  %2934 = vmatprep.subr.bf16.mxu1 %v3028_v30 }
 0x343   : > { %v1611_v0 = vmul.f32 %v3017_v14, %v3505_v13 }
 0x345   : > { %v1627_v43 = vpack.c.bf16 %v1611_v0, %v1611_v0 }
 0x347   : > { %2931 = vmatmul.mubr.msk.bf16.vlgmr.msra.gmra.mrb[84].mxu0 %vm1437_vm3, %v1628_v9 }
 0x348   : > { %2925 = vmatmul.mubr.msk.bf16.vlgmr.msra.gmra.mrb[80].mxu1 %vm1437_vm3, %v1627_v43 }
 0x349   : > { %2935 = vmatpush3.bf16.msra.mxu1 %v2341_v39  ;;  %2936 = vmatprep.mubr.msk.bf16.mxu1 %vm3029_vm1, %v3028_v30 }
 0x34a   : > { %v3019_v11 = vpop.eup %3018 }
 0x34b   : > { %v1613_v13 = vmul.f32 %v3019_v11, %v3509_v58 }
 0x34d   : > { %v1629_v22 = vpack.c.bf16 %v1613_v13, %v1613_v13 }
 0x350   : > { %2937 = vmatmul.mubr.msk.bf16.vlgmr.msra.gmra.mrb[84].mxu1 %vm1437_vm3, %v1629_v22 }
 0x3da   : > { %v1687_v35 = vpop.f32.mrb[56].mxu0 }
 0x3db   : > { %2383 = vst.msk [vmem:[%s3632_s22] sm:$0xff] %vm285_vm0, %v1687_v35  ;;  %v2848_v33 = vpop.f32.mrb[57].mxu0 }
 0x3dc   : > { %v1690_v30 = vpop.f32.mrb[58].mxu0 }
 0x3dd   : > { %v2849_v58 = vpop.f32.mrb[59].mxu0 }
 0x3e2   : > { %v1733_v6 = vpop.f32.mrb[56].mxu1 }
 0x3e3   : > { %2384 = vst.msk [vmem:[%s3632_s22 + $0x8] sm:$0xff] %vm285_vm0, %v1733_v6  ;;  %v2854_v3 = vpop.f32.mrb[57].mxu1 }
 0x3e4   : > { %v1736_v25 = vpop.f32.mrb[58].mxu1 }
 0x3e5   : > { %v2855_v24 = vpop.f32.mrb[59].mxu1 }
 0x3ea   : > { %v1779_v29 = vpop.f32.mrb[60].mxu0 }
 0x3eb   : > { %2385 = vst.msk [vmem:[%s3632_s22 + $0x10] sm:$0xff] %vm285_vm0, %v1779_v29  ;;  %v2860_v46 = vpop.f32.mrb[61].mxu0 }
 0x3ec   : > { %v1782_v51 = vpop.f32.mrb[62].mxu0 }
 0x3ed   : > { %v2861_v23 = vpop.f32.mrb[63].mxu0 }
 0x3f2   : > { %v1871_v56 = vpop.f32.mrb[64].mxu0  ;;  %v1825_v45 = vpop.f32.mrb[60].mxu1 }
 0x3f3   : > { %2387 = vst.msk [vmem:[%s3632_s22 + $0x20] sm:$0xff] %vm285_vm0, %v1871_v56  ;;  %v2872_v7 = vpop.f32.mrb[65].mxu0  ;;  %2386 = vst.msk [vmem:[%s3632_s22 + $0x18] sm:$0xff] %vm285_vm0, %v1825_v45  ;;  %v2866_v57 = vpop.f32.mrb[61].mxu1 }
 0x3f4   : > { %v1874_v36 = vpop.f32.mrb[66].mxu0  ;;  %v1828_v54 = vpop.f32.mrb[62].mxu1 }
 0x3f5   : > { %v2873_v38 = vpop.f32.mrb[67].mxu0  ;;  %v2867_v59 = vpop.f32.mrb[63].mxu1 }
 0x3fa   : > { %v1963_v60 = vpop.f32.mrb[68].mxu0 }
 0x3fb   : > { %v1917_v27 = vpop.f32.mrb[64].mxu1  ;;  %2389 = vst.msk [vmem:[%s3632_s22 + $0x30] sm:$0xff] %vm285_vm0, %v1963_v60  ;;  %v2884_v61 = vpop.f32.mrb[69].mxu0 }
 0x3fc   : > { %2388 = vst.msk [vmem:[%s3632_s22 + $0x28] sm:$0xff] %vm285_vm0, %v1917_v27  ;;  %v2878_v49 = vpop.f32.mrb[65].mxu1  ;;  %v1966_v50 = vpop.f32.mrb[70].mxu0 }
 0x3fd   : > { %v1920_v1 = vpop.f32.mrb[66].mxu1  ;;  %v2885_v62 = vpop.f32.mrb[71].mxu0 }
 0x3fe   : > { %v2879_v2 = vpop.f32.mrb[67].mxu1 }
 0x402   : > { %v2055_v5 = vpop.f32.mrb[72].mxu0 }
 0x403   : > { %v2009_v8 = vpop.f32.mrb[68].mxu1  ;;  %2391 = vst.msk [vmem:[%s3632_s22 + $0x40] sm:$0xff] %vm285_vm0, %v2055_v5  ;;  %v2896_v40 = vpop.f32.mrb[73].mxu0 }
 0x404   : > { %2390 = vst.msk [vmem:[%s3632_s22 + $0x38] sm:$0xff] %vm285_vm0, %v2009_v8  ;;  %v2890_v42 = vpop.f32.mrb[69].mxu1  ;;  %v2058_v37 = vpop.f32.mrb[74].mxu0 }
 0x405   : > { %v2012_v47 = vpop.f32.mrb[70].mxu1  ;;  %v2897_v63 = vpop.f32.mrb[75].mxu0 }
 0x406   : > { %v2891_v18 = vpop.f32.mrb[71].mxu1 }
 0x40a   : > { %v2147_v32 = vpop.f32.mrb[76].mxu0 }
 0x40b   : > { %v2101_v17 = vpop.f32.mrb[72].mxu1  ;;  %2393 = vst.msk [vmem:[%s3632_s22 + $0x50] sm:$0xff] %vm285_vm0, %v2147_v32  ;;  %v2908_v55 = vpop.f32.mrb[77].mxu0 }
 0x40c   : > { %2392 = vst.msk [vmem:[%s3632_s22 + $0x48] sm:$0xff] %vm285_vm0, %v2101_v17  ;;  %v2902_v16 = vpop.f32.mrb[73].mxu1  ;;  %v2150_v12 = vpop.f32.mrb[78].mxu0 }
 0x40d   : > { %v2104_v52 = vpop.f32.mrb[74].mxu1  ;;  %v2909_v4 = vpop.f32.mrb[79].mxu0 }
 0x40e   : > { %v2903_v53 = vpop.f32.mrb[75].mxu1 }
 0x412   : > { %v2239_v41 = vpop.f32.mrb[80].mxu0 }
 0x413   : > { %v2193_v15 = vpop.f32.mrb[76].mxu1  ;;  %2395 = vst.msk [vmem:[%s3632_s22 + $0x60] sm:$0xff] %vm285_vm0, %v2239_v41  ;;  %v2920_v44 = vpop.f32.mrb[81].mxu0 }
 0x414   : > { %2394 = vst.msk [vmem:[%s3632_s22 + $0x58] sm:$0xff] %vm285_vm0, %v2193_v15  ;;  %v2914_v19 = vpop.f32.mrb[77].mxu1  ;;  %v2242_v48 = vpop.f32.mrb[82].mxu0 }
 0x415   : > { %v2196_v26 = vpop.f32.mrb[78].mxu1  ;;  %v2921_v21 = vpop.f32.mrb[83].mxu0 }
 0x416   : > { %v2915_v20 = vpop.f32.mrb[79].mxu1 }
 0x41a   : > { %v2331_v31 = vpop.f32.mrb[84].mxu0 }
 0x41b   : > { %v2285_v34 = vpop.f32.mrb[80].mxu1  ;;  %2397 = vst.msk [vmem:[%s3632_s22 + $0x70] sm:$0xff] %vm285_vm0, %v2331_v31  ;;  %v2932_v14 = vpop.f32.mrb[85].mxu0 }
 0x41c   : > { %2396 = vst.msk [vmem:[%s3632_s22 + $0x68] sm:$0xff] %vm285_vm0, %v2285_v34  ;;  %v2926_v28 = vpop.f32.mrb[81].mxu1  ;;  %v2334_v0 = vpop.f32.mrb[86].mxu0 }
 0x41d   : > { %v2288_v10 = vpop.f32.mrb[82].mxu1  ;;  %v2933_v43 = vpop.f32.mrb[87].mxu0 }
 0x41e   : > { %v2927_v9 = vpop.f32.mrb[83].mxu1 }
 0x423   : > { %v2377_v39 = vpop.f32.mrb[84].mxu1 }
 0x424   : > { %2398 = vst.msk [vmem:[%s3632_s22 + $0x78] sm:$0xff] %vm285_vm0, %v2377_v39  ;;  %v2938_v11 = vpop.f32.mrb[85].mxu1 }
 0x425   : > { %v2380_v13 = vpop.f32.mrb[86].mxu1 }
 0x426   : > { %v2939_v22 = vpop.f32.mrb[87].mxu1 }
 0x427 PF: > { %s14_s15 = sadd.s32 1, %s3026_s15  }
 0x428   : > { %p11_p4 = scmp.ge.s32.totalorder %s14_s15, 6  }
 0x42a   :  { %13 = sbr.rel (!%p11_p4) target bundleno = 1 (0x1), region = 73 }

</bundles_post_ra>
